<compile_context>
chip_gen: v7x
topology: tpu7x:2x2x1
jax: 0.10.0
libtpu: 0.0.40
codegen_flags: <defaults>
</compile_context>

<pallas_src>
import functools
import math

import jax
import jax.numpy as jnp
from jax import lax
from jax.experimental import pallas as pl
from jax.experimental.pallas import tpu as pltpu

_EPS = 1e-12        # torch F.normalize eps
_NEG_BIG = -1e30    # finite "-inf" for masked / padded / excluded logits


def _round_up(x, m):
    return (x + m - 1) // m * m


def _cdiv(a, b):
    return (a + b - 1) // b


def _l2_normalize(x):
    """Row-wise L2 normalize matching torch F.normalize: x / max(||x||, eps)."""
    ss = jnp.sum(x * x, axis=1, keepdims=True)
    return x * lax.rsqrt(jnp.maximum(ss, _EPS * _EPS))


def _focal_transform(ce, alpha, gamma):
    """FocalLoss on a per-row cross-entropy vector: alpha * (1-pt)^gamma * ce."""
    pt = jnp.exp(-ce)
    one_minus_pt = 1.0 - pt
    if float(gamma) == 2.0:
        fw = one_minus_pt * one_minus_pt
    elif float(gamma) == 1.0:
        fw = one_minus_pt
    else:
        fw = one_minus_pt ** gamma
    return alpha * fw * ce


# ------------------------------ kernel ---------------------------------------


def _arcface_kernel(feat_ref, wt_ref, labels_ref, loss_ref,
                    m_scr, l_scr, picked_scr, *,
                    s, cos_m, sin_m, th, mm, easy_margin,
                    num_classes, tile_c, has_pad,
                    use_focal, focal_alpha, focal_gamma):
    j = pl.program_id(1)  # class-tile index (reduction axis)

    @pl.when(j == 0)
    def _init():
        m_scr[...] = jnp.full_like(m_scr, _NEG_BIG)
        l_scr[...] = jnp.zeros_like(l_scr)
        picked_scr[...] = jnp.zeros_like(picked_scr)

    # feat_ref: (TN, D) bf16 = s * normalize(x); wt_ref: (D, TC) bf16 = normalize(W).T
    # -> logits = s * cosine, f32 accumulation on the MXU, canonical (M,K)x(K,N).
    logits = lax.dot_general(
        feat_ref[...], wt_ref[...],
        dimension_numbers=(((1,), (0,)), ((), ())),
        preferred_element_type=jnp.float32)                     # (TN, TC) f32

    tn, tc = logits.shape
    col = j * tile_c + lax.broadcasted_iota(jnp.int32, (tn, tc), 1)
    onehot = col == labels_ref[...]                             # (TN, TC) bool

    # accumulate the target's (unmodified) scaled cosine for the finalize fixup
    picked_scr[...] += jnp.sum(jnp.where(onehot, logits, 0.0),
                               axis=1, keepdims=True)

    # exclude the target column from the running LSE (its margined value is
    # re-added at finalize); mask padded class columns only when they exist.
    if has_pad:
        keep = jnp.logical_and(col < num_classes, jnp.logical_not(onehot))
        lse_logits = jnp.where(keep, logits, _NEG_BIG)
    else:
        lse_logits = jnp.where(onehot, _NEG_BIG, logits)

    # online (flash-style) logsumexp over the class dimension
    m_prev = m_scr[...]
    m_new = jnp.maximum(m_prev, jnp.max(lse_logits, axis=1, keepdims=True))
    l_scr[...] = (l_scr[...] * jnp.exp(m_prev - m_new)
                  + jnp.sum(jnp.exp(lse_logits - m_new), axis=1, keepdims=True))
    m_scr[...] = m_new

    @pl.when(j == pl.num_programs(1) - 1)
    def _finalize():
        # per-row ArcFace margin fixup on (TN, 1) vectors only
        cos_t = picked_scr[...] * (1.0 / s)
        sin_t = jnp.sqrt(jnp.clip(1.0 - cos_t * cos_t, 0.0, 1.0))
        phi = cos_t * cos_m - sin_t * sin_m
        if easy_margin:
            phi = jnp.where(cos_t > 0.0, phi, cos_t)
        else:
            phi = jnp.where(cos_t > th, phi, cos_t - mm)
        tgt = phi * s                                           # margined target logit
        m_fin = jnp.maximum(m_scr[...], tgt)
        l_fin = l_scr[...] * jnp.exp(m_scr[...] - m_fin) + jnp.exp(tgt - m_fin)
        ce = m_fin + jnp.log(l_fin) - tgt                       # per-row CE
        if use_focal:
            ce = _focal_transform(ce, focal_alpha, focal_gamma)
        loss_ref[...] = ce


# ------------------------------ wrapper ---------------------------------------


def _arcface_per_row_loss(inputs, weight, targets, *, s, m, easy_margin,
                          use_focal, focal_alpha, focal_gamma):
    """Per-row ArcFace loss via the tiled Pallas kernel."""
    n, d = inputs.shape
    c, d2 = weight.shape
    assert d == d2, (inputs.shape, weight.shape)

    # --- pre-normalize once in f32, fold s into the features, cast to bf16 ---
    f = _l2_normalize(inputs.astype(jnp.float32)) * float(s)     # (N, D) f32
    w = _l2_normalize(weight.astype(jnp.float32))                # (C, D) f32

    # --- tile sizes ----------------------------------------------------------
    # rows: multiples of 16 sublanes (bf16-packed), cap 256; classes: multiples
    # of 128 lanes, cap 512 (MXU-friendly, tiny VMEM footprint on all gens).
    tile_n = min(256, _round_up(n, 16))
    # v7x megacore: ensure >=2 row tiles when N is large enough to split.
    if n >= 32 and _round_up(n, tile_n) // tile_n < 2:
        tile_n = _round_up(_cdiv(n, 2), 16)
    tile_c = min(512, _round_up(c, 128))

    n_pad = _round_up(n, tile_n)
    c_pad = _round_up(c, tile_c)
    d_pad = _round_up(d, 128)
    has_pad = c_pad != c

    labels = targets.astype(jnp.int32).reshape(n, 1)
    if d_pad != d:                      # zero-pad K -> identical contraction
        f = jnp.pad(f, ((0, 0), (0, d_pad - d)))
        w = jnp.pad(w, ((0, 0), (0, d_pad - d)))
    if n_pad != n:
        f = jnp.pad(f, ((0, n_pad - n), (0, 0)))
        labels = jnp.pad(labels, ((0, n_pad - n), (0, 0)))       # padded rows -> class 0
    if c_pad != c:
        w = jnp.pad(w, ((0, c_pad - c), (0, 0)))                 # masked in-kernel

    f_bf = f.astype(jnp.bfloat16)                                # (n_pad, d_pad)
    wt_bf = jnp.transpose(w).astype(jnp.bfloat16)                # (d_pad, c_pad)

    kernel = functools.partial(
        _arcface_kernel,
        s=float(s), cos_m=math.cos(m), sin_m=math.sin(m),
        th=math.cos(math.pi - m), mm=math.sin(math.pi - m) * m,
        easy_margin=bool(easy_margin), num_classes=int(c),
        tile_c=int(tile_c), has_pad=bool(has_pad),
        use_focal=bool(use_focal), focal_alpha=float(focal_alpha),
        focal_gamma=float(focal_gamma))

    per_row = pl.pallas_call(
        kernel,
        out_shape=jax.ShapeDtypeStruct((n_pad, 1), jnp.float32),
        grid_spec=pltpu.PrefetchScalarGridSpec(
            num_scalar_prefetch=0,
            grid=(n_pad // tile_n, c_pad // tile_c),
            in_specs=[
                pl.BlockSpec((tile_n, d_pad), lambda i, j: (i, 0)),   # features (bf16)
                pl.BlockSpec((d_pad, tile_c), lambda i, j: (0, j)),   # weights.T (bf16)
                pl.BlockSpec((tile_n, 1), lambda i, j: (i, 0)),       # labels
            ],
            out_specs=pl.BlockSpec((tile_n, 1), lambda i, j: (i, 0)),
            scratch_shapes=[pltpu.VMEM((tile_n, 1), jnp.float32),     # running max
                            pltpu.VMEM((tile_n, 1), jnp.float32),     # running sum
                            pltpu.VMEM((tile_n, 1), jnp.float32)],    # target logit
        ),
        compiler_params=pltpu.CompilerParams(
            dimension_semantics=("parallel", "arbitrary")),
    )(f_bf, wt_bf, labels)

    return per_row[:n, 0]


# ------------------------------ modules ---------------------------------------


class FocalLoss:
    """Config holder mirroring the PyTorch FocalLoss criterion.

    Its math (alpha * (1 - pt)^gamma * ce, mean over valid rows) is fused into
    the ArcFace kernel's finalize step rather than run as a separate pass.
    """

    def __init__(self, alpha=0.25, gamma=2.0, reduction='mean', ignore_index=-100):
        self.alpha = alpha
        self.gamma = gamma
        self.reduction = reduction
        self.ignore_index = ignore_index


class ArcFaceLoss:
    """JAX/Pallas port of the PyTorch ArcFaceLoss forward pass."""

    def __init__(self, in_features, out_features, s=64.0, m=0.5,
                 easy_margin=False, reduction='mean', use_focal_loss=False,
                 focal_gamma=2.0, focal_alpha=0.25, key=None):
        self.in_features = in_features
        self.out_features = out_features
        self.s = s
        self.m = m
        self.easy_margin = easy_margin
        self.reduction = reduction
        self.use_focal_loss = use_focal_loss
        self.focal_gamma = focal_gamma
        self.focal_alpha = focal_alpha
        self.ignore_index = -100   # nn.CrossEntropyLoss / FocalLoss default
        if use_focal_loss:
            self.criterion = FocalLoss(alpha=focal_alpha, gamma=focal_gamma,
                                       reduction=reduction)
        else:
            self.criterion = None  # fused CE
        if key is None:
            key = jax.random.PRNGKey(0)
        # nn.init.xavier_uniform_: U(-a, a), a = sqrt(6 / (fan_in + fan_out))
        a = math.sqrt(6.0 / (in_features + out_features))
        self.weight = jax.random.uniform(
            key, (out_features, in_features), jnp.float32, minval=-a, maxval=a)

    def __call__(self, inputs, targets):
        targets = targets.astype(jnp.int32)
        per_row = _arcface_per_row_loss(
            inputs, self.weight, targets, s=self.s, m=self.m,
            easy_margin=self.easy_margin, use_focal=self.use_focal_loss,
            focal_alpha=self.focal_alpha, focal_gamma=self.focal_gamma)
        valid = targets != self.ignore_index
        per_row = jnp.where(valid, per_row, 0.0)
        n_valid = jnp.sum(valid.astype(jnp.float32))
        if self.reduction == 'mean':
            return jnp.where(n_valid > 0,
                             jnp.sum(per_row) / jnp.maximum(n_valid, 1.0), 0.0)
        elif self.reduction == 'sum':
            return jnp.sum(per_row)
        elif self.reduction == 'none':
            # TODO(synk): torch's FocalLoss 'none' returns only the valid rows
            # (dynamic shape); here ignored rows are returned as 0.0 instead.
            return per_row
        else:
            raise ValueError(f'Invalid reduction type: {self.reduction}')


# --------------------------- pure-JAX reference --------------------------------


def _ref_arcface(inputs, weight, targets, *, s, m, easy_margin, use_focal,
                 focal_alpha, focal_gamma, reduction='mean'):
    # Matches the kernel's numerics (f32 rsqrt-normalize, s folded into the
    # features, bf16 MXU operands, f32 accumulation) so tolerances stay tight.
    f = (_l2_normalize(inputs.astype(jnp.float32)) * float(s)).astype(jnp.bfloat16)
    w = _l2_normalize(weight.astype(jnp.float32)).astype(jnp.bfloat16)
    logits = lax.dot_general(f, w, (((1,), (1,)), ((), ())),
                             preferred_element_type=jnp.float32)   # s * cosine
    cosine = logits / s
    sine = jnp.sqrt(jnp.clip(1.0 - cosine * cosine, 0.0, 1.0))
    cos_m, sin_m = math.cos(m), math.sin(m)
    th, mm = math.cos(math.pi - m), math.sin(math.pi - m) * m
    phi = cosine * cos_m - sine * sin_m
    if easy_margin:
        phi = jnp.where(cosine > 0.0, phi, cosine)
    else:
        phi = jnp.where(cosine > th, phi, cosine - mm)
    onehot = jax.nn.one_hot(targets, weight.shape[0], dtype=jnp.float32) > 0.5
    output = jnp.where(onehot, phi * s, logits)
    lse = jax.scipy.special.logsumexp(output, axis=1)
    picked = jnp.take_along_axis(output, targets[:, None].astype(jnp.int32),
                                 axis=1)[:, 0]
    ce = lse - picked
    if use_focal:
        ce = _focal_transform(ce, focal_alpha, focal_gamma)
    if reduction == 'mean':
        return jnp.mean(ce)
    elif reduction == 'sum':
        return jnp.sum(ce)
    return ce


if __name__ == "__main__":
    N, D, C = 16, 32, 12   # batch, in_features (feat_dim), out_features (classes)

    key = jax.random.PRNGKey(0)
    k_feat, k_lab, k_w = jax.random.split(key, 3)
    inputs = jax.random.normal(k_feat, (N, D), jnp.float32)
    targets = jax.random.randint(k_lab, (N,), 0, C, jnp.int32)

    def _close(a, b, tol=2e-3):
        return abs(float(a) - float(b)) <= tol * max(1.0, abs(float(b)))

    # --- default: ArcFace + CrossEntropyLoss, reduction='mean' ---
    mod = ArcFaceLoss(D, C, key=k_w)
    loss = jax.block_until_ready(mod(inputs, targets))
    ref = _ref_arcface(inputs, mod.weight, targets, s=mod.s, m=mod.m,
                       easy_margin=False, use_focal=False,
                       focal_alpha=0.25, focal_gamma=2.0)
    assert _close(loss, ref), (float(loss), float(ref))

    # --- ArcFace + FocalLoss criterion ---
    mod_f = ArcFaceLoss(D, C, use_focal_loss=True, key=k_w)
    loss_f = jax.block_until_ready(mod_f(inputs, targets))
    ref_f = _ref_arcface(inputs, mod_f.weight, targets, s=mod_f.s, m=mod_f.m,
                         easy_margin=False, use_focal=True,
                         focal_alpha=0.25, focal_gamma=2.0)
    assert _close(loss_f, ref_f), (float(loss_f), float(ref_f))

    # --- easy_margin variant ---
    mod_e = ArcFaceLoss(D, C, easy_margin=True, key=k_w)
    loss_e = jax.block_until_ready(mod_e(inputs, targets))
    ref_e = _ref_arcface(inputs, mod_e.weight, targets, s=mod_e.s, m=mod_e.m,
                         easy_margin=True, use_focal=False,
                         focal_alpha=0.25, focal_gamma=2.0)
    assert _close(loss_e, ref_e), (float(loss_e), float(ref_e))

    print("KERNEL_OK")
</pallas_src>

<mosaic_0001>
module attributes {stable_mosaic.version = 11 : i64} {
  func.func @_arcface_kernel(%arg0: i32, %arg1: i32, %arg2: memref<16x128xbf16, #tpu.memory_space<vmem>>, %arg3: memref<128x128xbf16, #tpu.memory_space<vmem>>, %arg4: memref<16x1xi32, #tpu.memory_space<vmem>>, %arg5: memref<16x1xf32, #tpu.memory_space<vmem>>, %arg6: memref<16x1xf32, #tpu.memory_space<vmem>>, %arg7: memref<16x1xf32, #tpu.memory_space<vmem>>, %arg8: memref<16x1xf32, #tpu.memory_space<vmem>>) attributes {dimension_semantics = [#tpu.dimension_semantics<parallel>, #tpu.dimension_semantics<arbitrary>], iteration_bounds = array<i64: 1, 1>, scalar_prefetch = 0 : i64, scratch_operands = 3 : i64, tpu.core_type = #tpu.core_type<tc>, window_params = [{transform_indices = @transform_0, window_bounds = array<i64: 16, 128>}, {transform_indices = @transform_1, window_bounds = array<i64: 128, 128>}, {transform_indices = @transform_2, window_bounds = array<i64: 16, 1>}, {transform_indices = @transform_3, window_bounds = array<i64: 16, 1>}]} {
    %c0_i32 = arith.constant 0 : i32
    %0 = arith.cmpi eq, %arg1, %c0_i32 : i32
    %1 = arith.extui %0 : i1 to i32
    %c0_i32_0 = arith.constant 0 : i32
    %2 = arith.cmpi ne, %1, %c0_i32_0 : i32
    scf.if %2 {
      %cst_26 = arith.constant -1.000000e+30 : f32
      %45 = vector.broadcast %cst_26 : f32 to vector<16x1xf32>
      %c0_27 = arith.constant 0 : index
      %c0_28 = arith.constant 0 : index
      %46 = vector.load %arg6[%c0_27, %c0_28] : memref<16x1xf32, #tpu.memory_space<vmem>>, vector<16x1xf32>
      tpu.vector_store %arg6[%c0_27, %c0_28], %45 {strides = array<i32>} : memref<16x1xf32, #tpu.memory_space<vmem>>, vector<16x1xf32>,
      %cst_29 = arith.constant 0.000000e+00 : f32
      %47 = vector.broadcast %cst_29 : f32 to vector<16x1xf32>
      %c0_30 = arith.constant 0 : index
      %c0_31 = arith.constant 0 : index
      %48 = vector.load %arg7[%c0_30, %c0_31] : memref<16x1xf32, #tpu.memory_space<vmem>>, vector<16x1xf32>
      tpu.vector_store %arg7[%c0_30, %c0_31], %47 {strides = array<i32>} : memref<16x1xf32, #tpu.memory_space<vmem>>, vector<16x1xf32>,
      %cst_32 = arith.constant 0.000000e+00 : f32
      %49 = vector.broadcast %cst_32 : f32 to vector<16x1xf32>
      %c0_33 = arith.constant 0 : index
      %c0_34 = arith.constant 0 : index
      %50 = vector.load %arg8[%c0_33, %c0_34] : memref<16x1xf32, #tpu.memory_space<vmem>>, vector<16x1xf32>
      tpu.vector_store %arg8[%c0_33, %c0_34], %49 {strides = array<i32>} : memref<16x1xf32, #tpu.memory_space<vmem>>, vector<16x1xf32>,
    } else {
    }
    %c0 = arith.constant 0 : index
    %c0_1 = arith.constant 0 : index
    %3 = vector.load %arg2[%c0, %c0_1] : memref<16x128xbf16, #tpu.memory_space<vmem>>, vector<16x128xbf16>
    %c0_2 = arith.constant 0 : index
    %c0_3 = arith.constant 0 : index
    %4 = vector.load %arg3[%c0_2, %c0_3] : memref<128x128xbf16, #tpu.memory_space<vmem>>, vector<128x128xbf16>
    %cst = arith.constant dense<0.000000e+00> : vector<16x128xf32>
    %5 = tpu.matmul %3, %4, %cst {dimension_numbers = #tpu.dot_dimension_numbers<[1], [0], [0], [1], [0, 0, 1, 1], [], []>} : vector<16x128xbf16>, vector<128x128xbf16>, vector<16x128xf32> -> vector<16x128xf32>
    %c128_i32 = arith.constant 128 : i32
    %6 = arith.muli %arg1, %c128_i32 : i32
    %7 = tpu.iota {dimensions = array<i32: 1>} : vector<16x128xi32>
    %8 = vector.broadcast %6 : i32 to vector<16x128xi32>
    %9 = arith.addi %8, %7 : vector<16x128xi32>
    %c0_4 = arith.constant 0 : index
    %c0_5 = arith.constant 0 : index
    %10 = vector.load %arg4[%c0_4, %c0_5] : memref<16x1xi32, #tpu.memory_space<vmem>>, vector<16x1xi32>
    %11 = vector.broadcast %10 : vector<16x1xi32> to vector<16x128xi32>
    %12 = arith.cmpi eq, %9, %11 : vector<16x128xi32>
    %c0_6 = arith.constant 0 : index
    %c0_7 = arith.constant 0 : index
    %13 = vector.load %arg8[%c0_6, %c0_7] : memref<16x1xf32, #tpu.memory_space<vmem>>, vector<16x1xf32>
    %cst_8 = arith.constant 0.000000e+00 : f32
    %14 = vector.broadcast %cst_8 : f32 to vector<16x128xf32>
    %15 = arith.select %12, %5, %14 : vector<16x128xi1>, vector<16x128xf32>
    %cst_9 = arith.constant dense<0.000000e+00> : vector<16xf32>
    %16 = vector.multi_reduction <add>, %15, %cst_9 [1] : vector<16x128xf32> to vector<16xf32>
    %17 = vector.shape_cast %16 : vector<16xf32> to vector<16x1xf32>
    %18 = arith.addf %13, %17 : vector<16x1xf32>
    %c0_10 = arith.constant 0 : index
    %c0_11 = arith.constant 0 : index
    %19 = vector.load %arg8[%c0_10, %c0_11] : memref<16x1xf32, #tpu.memory_space<vmem>>, vector<16x1xf32>
    tpu.vector_store %arg8[%c0_10, %c0_11], %18 {strides = array<i32>} : memref<16x1xf32, #tpu.memory_space<vmem>>, vector<16x1xf32>,
    %c12_i32 = arith.constant 12 : i32
    %20 = vector.broadcast %c12_i32 : i32 to vector<16x128xi32>
    %21 = arith.cmpi slt, %9, %20 : vector<16x128xi32>
    %cst_12 = arith.constant dense<true> : vector<16x128xi1>
    %22 = arith.xori %12, %cst_12 : vector<16x128xi1>
    %23 = arith.andi %21, %22 : vector<16x128xi1>
    %cst_13 = arith.constant -1.000000e+30 : f32
    %24 = vector.broadcast %cst_13 : f32 to vector<16x128xf32>
    %25 = arith.select %23, %5, %24 : vector<16x128xi1>, vector<16x128xf32>
    %c0_14 = arith.constant 0 : index
    %c0_15 = arith.constant 0 : index
    %26 = vector.load %arg6[%c0_14, %c0_15] : memref<16x1xf32, #tpu.memory_space<vmem>>, vector<16x1xf32>
    %cst_16 = arith.constant dense<0xFF800000> : vector<16xf32>
    %27 = vector.multi_reduction <maximumf>, %25, %cst_16 [1] : vector<16x128xf32> to vector<16xf32>
    %28 = vector.shape_cast %27 : vector<16xf32> to vector<16x1xf32>
    %29 = arith.maximumf %26, %28 : vector<16x1xf32>
    %c0_17 = arith.constant 0 : index
    %c0_18 = arith.constant 0 : index
    %30 = vector.load %arg7[%c0_17, %c0_18] : memref<16x1xf32, #tpu.memory_space<vmem>>, vector<16x1xf32>
    %31 = arith.subf %26, %29 : vector<16x1xf32>
    %32 = math.exp %31 : vector<16x1xf32>
    %33 = arith.mulf %30, %32 : vector<16x1xf32>
    %34 = vector.broadcast %29 : vector<16x1xf32> to vector<16x128xf32>
    %35 = arith.subf %25, %34 : vector<16x128xf32>
    %36 = math.exp %35 : vector<16x128xf32>
    %cst_19 = arith.constant dense<0.000000e+00> : vector<16xf32>
    %37 = vector.multi_reduction <add>, %36, %cst_19 [1] : vector<16x128xf32> to vector<16xf32>
    %38 = vector.shape_cast %37 : vector<16xf32> to vector<16x1xf32>
    %39 = arith.addf %33, %38 : vector<16x1xf32>
    %c0_20 = arith.constant 0 : index
    %c0_21 = arith.constant 0 : index
    %40 = vector.load %arg7[%c0_20, %c0_21] : memref<16x1xf32, #tpu.memory_space<vmem>>, vector<16x1xf32>
    tpu.vector_store %arg7[%c0_20, %c0_21], %39 {strides = array<i32>} : memref<16x1xf32, #tpu.memory_space<vmem>>, vector<16x1xf32>,
    %c0_22 = arith.constant 0 : index
    %c0_23 = arith.constant 0 : index
    %41 = vector.load %arg6[%c0_22, %c0_23] : memref<16x1xf32, #tpu.memory_space<vmem>>, vector<16x1xf32>
    tpu.vector_store %arg6[%c0_22, %c0_23], %29 {strides = array<i32>} : memref<16x1xf32, #tpu.memory_space<vmem>>, vector<16x1xf32>,
    %c0_i32_24 = arith.constant 0 : i32
    %42 = arith.cmpi eq, %arg1, %c0_i32_24 : i32
    %43 = arith.extui %42 : i1 to i32
    %c0_i32_25 = arith.constant 0 : i32
    %44 = arith.cmpi ne, %43, %c0_i32_25 : i32
    scf.if %44 {
      %c0_26 = arith.constant 0 : index
      %c0_27 = arith.constant 0 : index
      %45 = vector.load %arg8[%c0_26, %c0_27] : memref<16x1xf32, #tpu.memory_space<vmem>>, vector<16x1xf32>
      %cst_28 = arith.constant 1.562500e-02 : f32
      %46 = vector.broadcast %cst_28 : f32 to vector<16x1xf32>
      %47 = arith.mulf %45, %46 : vector<16x1xf32>
      %48 = arith.mulf %47, %47 : vector<16x1xf32>
      %cst_29 = arith.constant 1.000000e+00 : f32
      %49 = vector.broadcast %cst_29 : f32 to vector<16x1xf32>
      %50 = arith.subf %49, %48 : vector<16x1xf32>
      %cst_30 = arith.constant 0.000000e+00 : f32
      %cst_31 = arith.constant 1.000000e+00 : f32
      %51 = vector.broadcast %cst_30 : f32 to vector<16x1xf32>
      %52 = arith.maximumf %51, %50 : vector<16x1xf32>
      %53 = vector.broadcast %cst_31 : f32 to vector<16x1xf32>
      %54 = arith.minimumf %53, %52 : vector<16x1xf32>
      %55 = math.sqrt %54 : vector<16x1xf32>
      %cst_32 = arith.constant 0.87758255 : f32
      %56 = vector.broadcast %cst_32 : f32 to vector<16x1xf32>
      %57 = arith.mulf %47, %56 : vector<16x1xf32>
      %cst_33 = arith.constant 0.47942555 : f32
      %58 = vector.broadcast %cst_33 : f32 to vector<16x1xf32>
      %59 = arith.mulf %55, %58 : vector<16x1xf32>
      %60 = arith.subf %57, %59 : vector<16x1xf32>
      %cst_34 = arith.constant -0.87758255 : f32
      %61 = vector.broadcast %cst_34 : f32 to vector<16x1xf32>
      %62 = arith.cmpf ogt, %47, %61 : vector<16x1xf32>
      %cst_35 = arith.constant 0.239712775 : f32
      %63 = vector.broadcast %cst_35 : f32 to vector<16x1xf32>
      %64 = arith.subf %47, %63 : vector<16x1xf32>
      %65 = arith.select %62, %60, %64 : vector<16x1xi1>, vector<16x1xf32>
      %cst_36 = arith.constant 6.400000e+01 : f32
      %66 = vector.broadcast %cst_36 : f32 to vector<16x1xf32>
      %67 = arith.mulf %65, %66 : vector<16x1xf32>
      %c0_37 = arith.constant 0 : index
      %c0_38 = arith.constant 0 : index
      %68 = vector.load %arg6[%c0_37, %c0_38] : memref<16x1xf32, #tpu.memory_space<vmem>>, vector<16x1xf32>
      %69 = arith.maximumf %68, %67 : vector<16x1xf32>
      %c0_39 = arith.constant 0 : index
      %c0_40 = arith.constant 0 : index
      %70 = vector.load %arg7[%c0_39, %c0_40] : memref<16x1xf32, #tpu.memory_space<vmem>>, vector<16x1xf32>
      %c0_41 = arith.constant 0 : index
      %c0_42 = arith.constant 0 : index
      %71 = vector.load %arg6[%c0_41, %c0_42] : memref<16x1xf32, #tpu.memory_space<vmem>>, vector<16x1xf32>
      %72 = arith.subf %71, %69 : vector<16x1xf32>
      %73 = math.exp %72 : vector<16x1xf32>
      %74 = arith.mulf %70, %73 : vector<16x1xf32>
      %75 = arith.subf %67, %69 : vector<16x1xf32>
      %76 = math.exp %75 : vector<16x1xf32>
      %77 = arith.addf %74, %76 : vector<16x1xf32>
      %78 = math.log %77 : vector<16x1xf32>
      %79 = arith.addf %69, %78 : vector<16x1xf32>
      %80 = arith.subf %79, %67 : vector<16x1xf32>
      %c0_43 = arith.constant 0 : index
      %c0_44 = arith.constant 0 : index
      %81 = vector.load %arg5[%c0_43, %c0_44] : memref<16x1xf32, #tpu.memory_space<vmem>>, vector<16x1xf32>
      tpu.vector_store %arg5[%c0_43, %c0_44], %80 {strides = array<i32>} : memref<16x1xf32, #tpu.memory_space<vmem>>, vector<16x1xf32>,
    } else {
    }
    return
  }
  func.func @transform_0(%arg0: i32, %arg1: i32) -> (i32, i32) {
    %c0_i32 = arith.constant 0 : i32
    %c0_i32_0 = arith.constant 0 : i32
    return %arg0, %c0_i32 : i32, i32
  }
  func.func @transform_1(%arg0: i32, %arg1: i32) -> (i32, i32) {
    %c0_i32 = arith.constant 0 : i32
    %c0_i32_0 = arith.constant 0 : i32
    return %c0_i32, %arg1 : i32, i32
  }
  func.func @transform_2(%arg0: i32, %arg1: i32) -> (i32, i32) {
    %c0_i32 = arith.constant 0 : i32
    %c0_i32_0 = arith.constant 0 : i32
    return %arg0, %c0_i32 : i32, i32
  }
  func.func @transform_3(%arg0: i32, %arg1: i32) -> (i32, i32) {
    %c0_i32 = arith.constant 0 : i32
    %c0_i32_0 = arith.constant 0 : i32
    return %arg0, %c0_i32 : i32, i32
  }
}

</mosaic_0001>

<bundles_post_ra>
// kernel: tpu_custom_call.1
= control target key start
LH: loop header
LB: loop body
LE: loop exit
PB: predicated region body
PF: predicated region fallthrough
CT: control target
= control target key end

     0   :  { %8 = vsyncpa [#allocation6], 0  ;;  %s419_s12 = smov [#allocation5]   ;;  %s516_s0 = inlined_call_operand.vmem [shape: bf16[16,128], index: 0, kind: input, shape index: {}]   ;;  %s517_s1 = inlined_call_operand.hbm [shape: bf16[128,128], index: 1, kind: input, shape index: {}]   ;;  %s518_s2 = inlined_call_operand.vmem [shape: s32[16,1], index: 2, kind: input, shape index: {}]   ;;  %s519_s3 = inlined_call_operand.vmem [shape: f32[16,1], index: 3, kind: output, shape index: {}]  }
   0x1   :  { %s16_s13 = sshll.u32 %s419_s12, 4  ;;  %s395_s16 = scalar_lea.hbm %s517_s1, 1024  ;;  %s17_s13 = int_to_ptr.vmem [resolvable:$true] %s16_s13 }
   0x2   :  { %p396_p0 = scmp.ne.s32.totalorder %s517_s1, %s395_s16  ;;  %p399_p1 = scmp.lt.u32.totalorder %s395_s16, %s517_s1 }
   0x4   :  { %p401_p2 = pnand %p399_p1, %p396_p0 }
   0x6   :  { %404 = shalt.err (!%p401_p2)
}
   0x7   :  { %s405_s21 = scalar_lea.vmem %s17_s13, 1024  ;;  %p410_p4 = scmp.lt.s32.totalorder %s17_s13, %s17_s13 }
   0x8   :  { %p406_p3 = scmp.ne.s32.totalorder %s17_s13, %s405_s21  ;;  %p411_p5 = scmp.lt.s32.totalorder %s405_s21, %s405_s21 }
   0xa   :  { %p412_p6 = por %p411_p5, %p410_p4 }
   0xc   :  { %p413_p7 = pnand %p412_p6, %p406_p3 }
   0xe   :  { %416 = shalt.err (!%p413_p7)
}
   0xf   :  { %s420_s22 = smov 64   ;;  %s421_s23 = smov 4  }
  0x10   :  { %22 = dma.hbm_to_vmem [thread:$0]  %s517_s1, 1024, %s17_s13, [#allocation6], %s420_s22, %s420_s22, %s421_s23  }
  0x11   :  { %417 = dma.done.wait [#allocation6], 1024  }
  0x12   :  { %418 = vsyncadd [#allocation6], 4294966272  ;;  %v422_v0 = vmov 0.0   ;;  %vm423_vm0 = vmmov 0   ;;  %v424_v1 = vmov 0   ;;  %v362_v2 = vld [vmem:[#allocation5] sm:$0xff]   ;;  %v154_v14 = vlaneseq }
  0x13   :  { %332 = vmatprep.subr.bf16.mxu0 %v422_v0  ;;  %348 = vmatprep.mubr.msk.bf16.mxu0 %vm423_vm0, %v422_v0  ;;  %v363_v3 = vld [vmem:[#allocation5 + $0x8] sm:$0xff]   ;;  %v364_v4 = vld [vmem:[#allocation5 + $0x10] sm:$0xff]   ;;  %v365_v6 = vld [vmem:[#allocation5 + $0x18] sm:$0xff]   ;;  %vm33_vm1 = vcmask 7168   ;;  %v425_v13 = vmov -1e+30  }
  0x14   :  { %360 = vset.pattern.permute.xlu0 %v424_v1  ;;  %361 = vset.pattern.permute.xlu1 %v424_v1  ;;  %v158_v5 = vld [vmem:[%s518_s2] sm:$0xff]  ;;  %v159_v7 = vld [vmem:[%s518_s2 + $0x8] sm:$0xff]  ;;  %v366_v8 = vld [vmem:[#allocation5 + $0x20] sm:$0xff]   ;;  %34 = vst.msk [vmem:[#allocation2] sm:$0xff] %vm33_vm1, %v425_v13  ;;  %v155_v15 = vand.u32 127, %v154_v14  ;;  %vm426_vm3 = vmmov 1  }
  0x15   :  { %333 = vmatpush3.bf16.msra.mxu0 %v362_v2  ;;  %161 = vperm.xlu0 %360, %v158_v5   ;;  %v367_v9 = vld [vmem:[#allocation5 + $0x28] sm:$0xff]   ;;  %v368_v10 = vld [vmem:[#allocation5 + $0x30] sm:$0xff]   ;;  %v369_v11 = vld [vmem:[#allocation5 + $0x38] sm:$0xff]   ;;  %35 = vst.msk [vmem:[#allocation2 + $0x8] sm:$0xff] %vm33_vm1, %v425_v13 }
  0x16   :  { %334 = vmatprep.subr.bf16.mxu0 %v422_v0  ;;  %v370_v12 = vld [vmem:[%s516_s0] sm:$0xff]   ;;  %36 = vst.msk [vmem:[#allocation3] sm:$0xff] %vm33_vm1, %v422_v0  ;;  %37 = vst.msk [vmem:[#allocation3 + $0x8] sm:$0xff] %vm33_vm1, %v422_v0  ;;  %vm181_vm5 = vcmp.lt.s32.totalorder %v155_v15, 12 }
  0x17   :  { %38 = vst.msk [vmem:[#allocation4] sm:$0xff] %vm33_vm1, %v422_v0  ;;  %39 = vst.msk [vmem:[#allocation4 + $0x8] sm:$0xff] %vm33_vm1, %v422_v0 }
  0x19   :  { %335 = vmatpush3.bf16.msra.mxu0 %v363_v3  ;;  %164 = vperm.xlu0 %360, %v159_v7  }
  0x1a   :  { %336 = vmatprep.subr.bf16.mxu0 %v422_v0 }
  0x1b   :  { %v476_v24 = vld [vmem:[#allocation2] sm:$0xff] }
  0x1c   :  { %v481_v27 = vld [vmem:[#allocation2 + $0x8] sm:$0xff] }
  0x1d   :  { %337 = vmatpush3.bf16.msra.mxu0 %v364_v4 }
  0x1e   :  { %338 = vmatprep.subr.bf16.mxu0 %v422_v0  ;;  %v168_v42 = vld [vmem:[#allocation4] sm:$0xff]  ;;  %v169_v45 = vld [vmem:[#allocation4 + $0x8] sm:$0xff] }
  0x21   :  { %339 = vmatpush3.bf16.msra.mxu0 %v365_v6 }
  0x22   :  { %340 = vmatprep.subr.bf16.mxu0 %v422_v0 }
  0x25   :  { %341 = vmatpush3.bf16.msra.mxu0 %v366_v8 }
  0x26   :  { %342 = vmatprep.subr.bf16.mxu0 %v422_v0 }
  0x29   :  { %343 = vmatpush3.bf16.msra.mxu0 %v367_v9 }
  0x2a   :  { %344 = vmatprep.subr.bf16.mxu0 %v422_v0 }
  0x2d   :  { %345 = vmatpush3.bf16.msra.mxu0 %v368_v10 }
  0x2e   :  { %346 = vmatprep.subr.bf16.mxu0 %v422_v0 }
  0x31   :  { %347 = vmatpush3.bf16.msra.mxu0 %v369_v11 }
  0x34   :  { %349 = vmatmul.mubr.bf16.vlgmr.msra.gmra.mrb[0].mxu0 %v370_v12 }
  0x94   :  { %v162_v16 = vpop.permute.xlu0 %161 }
  0x95   :  { %vm166_vm2 = vcmp.eq.s32.totalorder %v155_v15, %v162_v16 }
  0x96   :  { %vm182_vm4 = vmxor %vm166_vm2, %vm426_vm3 }
  0x97   :  { %vm184_vm7 = vmand %vm181_vm5, %vm182_vm4 }
  0x98   :  { %v165_v17 = vpop.permute.xlu0 %164 }
  0x99   :  { %vm167_vm6 = vcmp.eq.s32.totalorder %v155_v15, %v165_v17 }
  0x9a   :  { %vm183_vm8 = vmxor %vm167_vm6, %vm426_vm3 }
  0x9b   :  { %vm185_vm9 = vmand %vm181_vm5, %vm183_vm8 }
 0x107   :  { %v146_v18 = vpop.f32.mrb[0].mxu0 }
 0x108   :  { %v350_v19 = vpop.f32.mrb[1].mxu0  ;;  %v186_v20 = vsel %vm184_vm7, %v146_v18, -1e+30  ;;  %v170_v32 = vsel %vm166_vm2, %v146_v18, 0.0 }
 0x109   :  { %190 = vmax.xlane.f32.xlu1 %v186_v20  ;;  %v149_v21 = vpop.f32.mrb[2].mxu0 }
 0x10a   :  { %v351_v22 = vpop.f32.mrb[3].mxu0  ;;  %v187_v23 = vsel %vm185_vm9, %v149_v21, -1e+30  ;;  %v171_v33 = vsel %vm167_vm6, %v149_v21, 0.0 }
 0x10d   :  { %192 = vmax.xlane.f32.xlu1 %v187_v23 }
 0x196   :  { %v191_v25 = vpop.xlane.xlu1 %190 }
 0x197   :  { %v479_v26 = vmax.f32 %v476_v24, %v191_v25 }
 0x199   :  { %v198_v28 = vsub.f32 %v476_v24, %v479_v26  ;;  %230 = vst.msk [vmem:[#allocation2] sm:$0xff] %vm33_vm1, %v479_v26  ;;  %208 = vperm.xlu0 %360, %v479_v26   ;;  %v196_v24 = vld [vmem:[#allocation3] sm:$0xff] }
 0x19a   :  { %v193_v29 = vpop.xlane.xlu1 %192 }
 0x19b   :  { %v489_v30 = vmax.f32 %v481_v27, %v193_v29  ;;  %v200_v14 = vmul.f32 1.442695, %v198_v28 }
 0x19d   :  { %v199_v31 = vsub.f32 %v481_v27, %v489_v30  ;;  %231 = vst.msk [vmem:[#allocation2 + $0x8] sm:$0xff] %vm33_vm1, %v489_v30  ;;  %213 = vperm.xlu1 %361, %v489_v30   ;;  %v197_v27 = vld [vmem:[#allocation3 + $0x8] sm:$0xff] }
 0x19f   :  { %v202_v18 = vmul.f32 1.442695, %v199_v31 }
 0x1a0   :  { %v275_v19 = vld [vmem:[#allocation2] sm:$0xff] }
 0x1a4   :  { %v276_v22 = vld [vmem:[#allocation2 + $0x8] sm:$0xff] }
 0x1b8   :  { %172 = vadd.xlane.f32.xlu0 %v170_v32 }
 0x1c1   :  { %174 = vadd.xlane.f32.xlu1 %v171_v33 }
 0x218   :  { %v209_v34 = vpop.permute.xlu0 %208 }
 0x219   :  { %v216_v35 = vsub.f32 %v186_v20, %v209_v34 }
 0x21b   :  { %v218_v36 = vmul.f32 1.442695, %v216_v35 }
 0x21c   :  { %v214_v37 = vpop.permute.xlu1 %213 }
 0x21d   :  { %371 = vpow2.f32 %v218_v36  ;;  %v217_v38 = vsub.f32 %v187_v23, %v214_v37 }
 0x21f   :  { %v220_v39 = vmul.f32 1.442695, %v217_v38 }
 0x221   :  { %373 = vpow2.f32 %v220_v39 }
 0x227   :  { %v372_v40 = vpop.eup %371 }
 0x228   :  { %222 = vadd.xlane.f32.xlu0 %v372_v40 }
 0x22b   :  { %v374_v41 = vpop.eup %373 }
 0x22c   :  { %224 = vadd.xlane.f32.xlu0 %v374_v41 }
 0x245   :  { %v173_v43 = vpop.xlane.xlu0 %172 }
 0x246   :  { %v176_v44 = vadd.f32 %v173_v43, %v168_v42 }
 0x248   :  { %179 = vst.msk [vmem:[#allocation4] sm:$0xff] %vm33_vm1, %v176_v44 }
 0x24e   :  { %v175_v46 = vpop.xlane.xlu1 %174 }
 0x24f   :  { %v177_v47 = vadd.f32 %v175_v46, %v169_v45  ;;  %v235_v48 = vld [vmem:[#allocation4] sm:$0xff] }
 0x250   :  { %v237_v49 = vmul.f32 0.015625, %v235_v48 }
 0x251   :  { %180 = vst.msk [vmem:[#allocation4 + $0x8] sm:$0xff] %vm33_vm1, %v177_v47 }
 0x252   :  { %v239_v51 = vmul.f32 %v237_v49, %v237_v49  ;;  %v261_v7 = vmul.f32 0.87758255, %v237_v49  ;;  %v321_v10 = vadd.f32 -0.23971277, %v237_v49  ;;  %vm267_vm14 = vcmp.gt.f32.partialorder %v237_v49, -0.87758255 }
 0x254   :  { %v241_v53 = vsub.f32 1.0, %v239_v51 }
 0x256   :  { %v243_v55 = vmax.f32 %v241_v53, 0.0 }
 0x258   :  { %v236_v50 = vld [vmem:[#allocation4 + $0x8] sm:$0xff]  ;;  %v245_v57 = vmin.f32 %v243_v55, 1.0 }
 0x259   :  { %v238_v52 = vmul.f32 0.015625, %v236_v50 }
 0x25a   :  { %375 = vrsqrt.f32 %v245_v57  ;;  %vm249_vm10 = vcmp.eq.f32.partialorder %v245_v57, inf  ;;  %v252_v1 = vand.u32 2147483648, %v245_v57  ;;  %vm251_vm11 = vcmp.eq.f32.partialorder %v245_v57, 0.0 }
 0x25b   :  { %v240_v54 = vmul.f32 %v238_v52, %v238_v52  ;;  %v262_v11 = vmul.f32 0.87758255, %v238_v52  ;;  %v322_v15 = vadd.f32 -0.23971277, %v238_v52  ;;  %vm268_vm15 = vcmp.gt.f32.partialorder %v238_v52, -0.87758255 }
 0x25d   :  { %v242_v56 = vsub.f32 1.0, %v240_v54 }
 0x25f   :  { %v244_v58 = vmax.f32 %v242_v56, 0.0 }
 0x261   :  { %v246_v59 = vmin.f32 %v244_v58, 1.0 }
 0x263   :  { %377 = vrsqrt.f32 %v246_v59  ;;  %vm256_vm12 = vcmp.eq.f32.partialorder %v246_v59, inf  ;;  %v259_v4 = vand.u32 2147483648, %v246_v59  ;;  %vm258_vm13 = vcmp.eq.f32.partialorder %v246_v59, 0.0 }
 0x264   :  { %v376_v60 = vpop.eup %375  ;;  %379 = vpow2.f32 %v200_v14 }
 0x265   :  { %v248_v61 = vmul.f32 %v376_v60, %v245_v57  ;;  %381 = vpow2.f32 %v202_v18 }
 0x267   :  { %v250_v63 = vsel %vm249_vm10, %v245_v57, %v248_v61 }
 0x268   :  { %v253_v2 = vsel %vm251_vm11, %v252_v1, %v250_v63 }
 0x269   :  { %v263_v5 = vmul.f32 0.47942555, %v253_v2 }
 0x26b   :  { %v265_v8 = vsub.f32 %v261_v7, %v263_v5 }
 0x26d   :  { %v378_v62 = vpop.eup %377  ;;  %v271_v12 = vsel %vm267_vm14, %v265_v8, %v321_v10 }
 0x26e   :  { %v255_v0 = vmul.f32 %v378_v62, %v246_v59  ;;  %v273_v16 = vmul.f32 64.0, %v271_v12  ;;  %v380_v32 = vpop.eup %379 }
 0x26f   :  { %v204_v35 = vmul.f32 %v380_v32, %v196_v24  ;;  %v382_v36 = vpop.eup %381 }
 0x270   :  { %v257_v3 = vsel %vm256_vm12, %v246_v59, %v255_v0  ;;  %v277_v21 = vmax.f32 %v275_v19, %v273_v16  ;;  %v205_v39 = vmul.f32 %v382_v36, %v197_v27 }
 0x271   :  { %v260_v6 = vsel %vm258_vm13, %v259_v4, %v257_v3 }
 0x272   :  { %v264_v9 = vmul.f32 0.47942555, %v260_v6  ;;  %v281_v23 = vsub.f32 %v275_v19, %v277_v21  ;;  %v289_v29 = vsub.f32 %v273_v16, %v277_v21 }
 0x274   :  { %v266_v13 = vsub.f32 %v262_v11, %v264_v9  ;;  %v283_v26 = vmul.f32 1.442695, %v281_v23  ;;  %v291_v33 = vmul.f32 1.442695, %v289_v29 }
 0x276   :  { %v272_v17 = vsel %vm268_vm15, %v266_v13, %v322_v15  ;;  %383 = vpow2.f32 %v283_v26 }
 0x277   :  { %v274_v20 = vmul.f32 64.0, %v272_v17  ;;  %385 = vpow2.f32 %v291_v33 }
 0x279   :  { %v278_v25 = vmax.f32 %v276_v22, %v274_v20 }
 0x27b   :  { %v282_v28 = vsub.f32 %v276_v22, %v278_v25  ;;  %v290_v34 = vsub.f32 %v274_v20, %v278_v25 }
 0x27d   :  { %v285_v30 = vmul.f32 1.442695, %v282_v28  ;;  %v293_v38 = vmul.f32 1.442695, %v290_v34 }
 0x27f   :  { %387 = vpow2.f32 %v285_v30 }
 0x280   :  { %389 = vpow2.f32 %v293_v38  ;;  %v384_v42 = vpop.eup %383 }
 0x281   :  { %v386_v45 = vpop.eup %385 }
 0x289   :  { %v388_v47 = vpop.eup %387 }
 0x28a   :  { %v390_v50 = vpop.eup %389 }
 0x2b5   :  { %v223_v37 = vpop.xlane.xlu0 %222 }
 0x2b6   :  { %v226_v31 = vadd.f32 %v223_v37, %v204_v35 }
 0x2b8   :  { %228 = vst.msk [vmem:[#allocation3] sm:$0xff] %vm33_vm1, %v226_v31 }
 0x2b9   :  { %v225_v40 = vpop.xlane.xlu0 %224 }
 0x2ba   :  { %v227_v41 = vadd.f32 %v225_v40, %v205_v39 }
 0x2bc   :  { %229 = vst.msk [vmem:[#allocation3 + $0x8] sm:$0xff] %vm33_vm1, %v227_v41 }
 0x2bf   :  { %v279_v43 = vld [vmem:[#allocation3] sm:$0xff] }
 0x2c0   :  { %v287_v44 = vmul.f32 %v384_v42, %v279_v43 }
 0x2c2   :  { %v295_v46 = vadd.f32 %v386_v45, %v287_v44 }
 0x2c3   :  { %v280_v48 = vld [vmem:[#allocation3 + $0x8] sm:$0xff] }
 0x2c4   :  { %391 = vlog2.f32 %v295_v46  ;;  %v288_v49 = vmul.f32 %v388_v47, %v280_v48 }
 0x2c6   :  { %v296_v51 = vadd.f32 %v390_v50, %v288_v49 }
 0x2c8   :  { %393 = vlog2.f32 %v296_v51 }
 0x2ce   :  { %v392_v52 = vpop.eup %391 }
 0x2cf   :  { %v298_v53 = vmul.f32 0.6931472, %v392_v52 }
 0x2d1   :  { %v301_v54 = vadd.f32 %v298_v53, %v277_v21 }
 0x2d2   :  { %v394_v55 = vpop.eup %393 }
 0x2d3   :  { %v303_v56 = vsub.f32 %v301_v54, %v273_v16  ;;  %v300_v57 = vmul.f32 0.6931472, %v394_v55 }
 0x2d5   :  { %305 = vst.msk [vmem:[%s519_s3] sm:$0xff] %vm33_vm1, %v303_v56  ;;  %v302_v58 = vadd.f32 %v300_v57, %v278_v25 }
 0x2d7   :  { %v304_v59 = vsub.f32 %v302_v58, %v274_v20 }
 0x2d9   :  { %306 = vst.msk [vmem:[%s519_s3 + $0x8] sm:$0xff] %vm33_vm1, %v304_v59 }
 0x2da   :  { %311 = vsyncpa [#allocation6], 1 }

</bundles_post_ra>
